<compile_context>
chip_gen: v5e
topology: v5e:2x2
jax: 0.10.0
libtpu: 0.0.40
codegen_flags: <defaults>
</compile_context>

<pallas_src>
import functools
import math

import jax
import jax.numpy as jnp
from jax import lax
from jax.experimental import pallas as pl
from jax.experimental.pallas import tpu as pltpu


def _msa_kernel(x_ref, w_ref, b_ref, o_ref, qkv_ref, *scratch,
                n_heads, approx_recip):
    # x_ref  : (1, S, D)  current batch row, compute dtype (f32 or bf16)
    # w_ref  : (D, 3D)    fused qkv weight (q cols pre-scaled by 1/sqrt(Dh)),
    #                     compute dtype; constant index_map -> stays resident
    # b_ref  : (1, 3D)    fused qkv bias (q third pre-scaled), f32
    # o_ref  : (1, S, D)  output row in torch's head-major-along-D layout
    # qkv_ref: (S, 3D)    f32 VMEM scratch holding the fused projection
    # scratch: optional (S, D) f32 VMEM accumulator (used when Dh % 128 != 0)
    D = w_ref.shape[0]
    Dh = D // n_heads
    out_acc = scratch[0] if scratch else None

    # One fused (S, D) @ (D, 3D) projection — the full-MXU workhorse.  f32
    # accumulation; result parked in VMEM so only one head's temporaries are
    # live at a time in the loop below.
    qkv_ref[...] = (
        jnp.dot(x_ref[0], w_ref[...], preferred_element_type=jnp.float32)
        + b_ref[...])

    qk_dims = (((1,), (1,)), ((), ()))   # 'qd,kd->qk' — no explicit K transpose

    # Per-head attention.  With typical Dh (64) these matmuls underfill the MXU
    # contraction by construction; the wins here are removing relayouts, casts
    # and S^2 VPU work, not chasing MXU utilization.
    for h in range(n_heads):             # static unroll; ref stores bound live ranges
        q = qkv_ref[:, h * Dh:(h + 1) * Dh].astype(x_ref.dtype)           # (S, Dh)
        k = qkv_ref[:, D + h * Dh:D + (h + 1) * Dh].astype(x_ref.dtype)   # (S, Dh)
        v = qkv_ref[:, 2 * D + h * Dh:2 * D + (h + 1) * Dh].astype(x_ref.dtype)

        s = lax.dot_general(q, k, qk_dims,
                            preferred_element_type=jnp.float32)           # (S, S) f32
        # Numerically-stable softmax, strictly f32.
        m = jnp.max(s, axis=-1, keepdims=True)
        p = jnp.exp(s - m)                                                 # (S, S) f32
        l = jnp.sum(p, axis=-1, keepdims=True)                             # (S, 1) f32

        pv = jnp.dot(p.astype(x_ref.dtype), v,
                     preferred_element_type=jnp.float32)                   # (S, Dh) f32
        # Normalize after PV: S*Dh multiplies instead of S*S.
        if approx_recip:
            out_h = pv * pl.reciprocal(l, approx=True)
        else:
            out_h = pv / l

        if out_acc is None:
            # Dh is a multiple of 128: per-head store is already lane-aligned.
            o_ref[0, :, h * Dh:(h + 1) * Dh] = out_h.astype(o_ref.dtype)
        else:
            out_acc[:, h * Dh:(h + 1) * Dh] = out_h

    if out_acc is not None:
        # Single lane-dense (S, D) store reproducing torch's
        # out.permute(0, 2, 1, 3).reshape(B, S, D) layout.
        o_ref[0] = out_acc[...].astype(o_ref.dtype)


def msa_forward(x, qkv_weight, qkv_bias, n_heads, compute_dtype=None,
                approx_recip=True):
    """Forward of the torch MSA module.

    x: (B, S, D); qkv_weight: (3D, D) torch nn.Linear layout (out x in);
    qkv_bias: (3D,).

    compute_dtype: dtype of MXU operands (x, weight, q/k/v, p).  Pass
      jnp.bfloat16 on v6e/v7x for ~2-4x matmul throughput and half the HBM
      traffic / resident-weight VMEM; accumulation and softmax stay f32.
    approx_recip: use the EUP approximate reciprocal for the softmax
      denominator (~1e-3 rel. error); set False for training-grade numerics.
    """
    B, S, D = x.shape
    assert D % n_heads == 0, f"Can't divide dimension {D} into {n_heads} heads"
    H = n_heads
    Dh = D // H
    if compute_dtype is None:
        compute_dtype = x.dtype
    compute_dtype = jnp.dtype(compute_dtype)

    # Re-pack torch's (3D, D) weight so the fused projection's output columns
    # are [q head0..H-1 | k head0..H-1 | v head0..H-1], Dh columns per head.
    # This matches the module's reshape(B, S, H, 3*Dh) + chunk(3, dim=-1):
    # output feature f -> head f // (3*Dh), part (f % (3*Dh)) // Dh.
    w = qkv_weight.reshape(H, 3, Dh, D)
    W = jnp.transpose(w, (1, 0, 2, 3)).reshape(3 * D, D).T          # (D, 3D)
    b = qkv_bias.reshape(H, 3, Dh)
    bias = jnp.transpose(b, (1, 0, 2)).reshape(1, 3 * D)

    # Fold the 1/sqrt(Dh) attention scale into the q columns here (runs once /
    # constant-folds under jit) instead of scaling activations every grid step.
    scale = 1.0 / math.sqrt(Dh)
    W = W.at[:, :D].multiply(scale)
    bias = bias.at[:, :D].multiply(scale)

    # MXU operands travel in compute_dtype (halves DMA + resident weight VMEM
    # for bf16); bias stays f32 so the f32 accumulator picks it up exactly.
    x_in = x.astype(compute_dtype)
    W = W.astype(compute_dtype)
    bias = bias.astype(jnp.float32)

    direct_store = (Dh % 128 == 0)
    scratch_shapes = [pltpu.VMEM((S, 3 * D), jnp.float32)]          # fused qkv
    if not direct_store:
        scratch_shapes.append(pltpu.VMEM((S, D), jnp.float32))      # head accumulator

    kernel = functools.partial(_msa_kernel, n_heads=H, approx_recip=approx_recip)

    # Realistic per-step VMEM working-set estimate (one head's temporaries are
    # live at a time thanks to the in-place per-head stores).
    cbytes = compute_dtype.itemsize
    obytes = jnp.dtype(x.dtype).itemsize
    est = (
        2 * S * D * cbytes                      # double-buffered x blocks
        + 2 * S * D * obytes                    # double-buffered out blocks
        + 2 * D * 3 * D * cbytes                # fused weight (default double-buffer)
        + 2 * 3 * D * 4                         # bias
        + S * 3 * D * 4                         # f32 qkv scratch
        + (0 if direct_store else S * D * 4)    # f32 head accumulator
        + 3 * S * S * 4                         # one head's scores / exp / cast temps
        + 4 * S * Dh * 4)                       # one head's q/k/v/out temps
    # Conservative cross-generation gating: v5e's default scoped limit is only
    # 16 MiB (v6e/v7x: 32 MiB) and v7x physical VMEM is 64 MiB per core, so
    # raise the limit whenever the estimate exceeds the smallest default and
    # clamp below the smallest physical capacity minus headroom.
    default_scoped = 16 << 20
    phys_cap = 56 << 20
    vmem_limit = None
    if est > default_scoped:
        vmem_limit = min(int(1.25 * est), phys_cap)
    # TODO(synk): for S large enough that `est` approaches phys_cap (S >~ 1-2k
    # at realistic D), switch to a KV-tiled online-softmax (flash) variant with
    # a (B, S//tq, H) grid so the working set is O(tq*tk + tq*D), and single-
    # buffer the constant weight/bias blocks (pipeline_mode=pl.Buffered(1)).

    return pl.pallas_call(
        kernel,
        out_shape=jax.ShapeDtypeStruct((B, S, D), x.dtype),
        grid_spec=pltpu.PrefetchScalarGridSpec(
            num_scalar_prefetch=0,
            grid=(B,),
            in_specs=[
                pl.BlockSpec((1, S, D), lambda bi: (bi, 0, 0)),     # x row
                pl.BlockSpec((D, 3 * D), lambda bi: (0, 0)),        # weight (resident)
                pl.BlockSpec((1, 3 * D), lambda bi: (0, 0)),        # bias (resident)
            ],
            out_specs=pl.BlockSpec((1, S, D), lambda bi: (bi, 0, 0)),
            scratch_shapes=scratch_shapes,
        ),
        compiler_params=pltpu.CompilerParams(
            dimension_semantics=("parallel",),   # batch rows shard across v7x's 2 TCs
            vmem_limit_bytes=vmem_limit,
        ),
    )(x_in, W, bias)


def msa_reference(x, qkv_weight, qkv_bias, n_heads):
    """Pure-JAX reference mirroring the PyTorch forward exactly."""
    B, S, D = x.shape
    Dh = D // n_heads
    qkv = x @ qkv_weight.T + qkv_bias                       # (B, S, 3D)
    qkv = qkv.reshape(B, S, n_heads, 3 * Dh)
    q, k, v = jnp.split(qkv, 3, axis=-1)                    # each (B, S, H, Dh)
    q = jnp.transpose(q, (0, 2, 1, 3))
    k = jnp.transpose(k, (0, 2, 1, 3))
    v = jnp.transpose(v, (0, 2, 1, 3))
    scores = (q @ jnp.swapaxes(k, -2, -1)) / math.sqrt(Dh)
    attn = jax.nn.softmax(scores, axis=-1)
    out = attn @ v
    return jnp.transpose(out, (0, 2, 1, 3)).reshape(B, S, D)


if __name__ == "__main__":
    # Small shapes consistent with the module: batch=2, seq=8, hidden d=32, heads=2
    B, S, D, H = 2, 8, 32, 2

    key = jax.random.PRNGKey(0)
    kx, kw, kb = jax.random.split(key, 3)
    x = jax.random.normal(kx, (B, S, D), dtype=jnp.float32)
    # Deterministic synthetic init for nn.Linear(d, 3*d): weight (3D, D), bias (3D,)
    bound = 1.0 / math.sqrt(D)
    qkv_weight = jax.random.uniform(kw, (3 * D, D), dtype=jnp.float32,
                                    minval=-bound, maxval=bound)
    qkv_bias = jax.random.uniform(kb, (3 * D,), dtype=jnp.float32,
                                  minval=-bound, maxval=bound)

    ref = msa_reference(x, qkv_weight, qkv_bias, H)

    # f32 path (default compute dtype = input dtype).
    out = jax.block_until_ready(msa_forward(x, qkv_weight, qkv_bias, H))
    assert out.shape == (B, S, D)
    # Tolerance covers the EUP approx-reciprocal in the softmax denominator;
    # layout/semantics bugs would show up as O(0.1+) errors.
    assert jnp.allclose(out, ref, atol=2e-2, rtol=2e-2), "f32 path mismatch vs reference"

    # bf16 MXU-operand path (the recommended configuration on v6e/v7x).
    out_bf16 = jax.block_until_ready(
        msa_forward(x, qkv_weight, qkv_bias, H, compute_dtype=jnp.bfloat16))
    assert out_bf16.shape == (B, S, D)
    assert jnp.allclose(out_bf16, ref, atol=1e-1, rtol=1e-1), "bf16 path mismatch vs reference"

    print("KERNEL_OK")
</pallas_src>

<mosaic_0001>
module attributes {stable_mosaic.version = 11 : i64} {
  func.func @_msa_kernel(%arg0: i32, %arg1: memref<1x8x32xf32, #tpu.memory_space<vmem>>, %arg2: memref<32x96xf32, #tpu.memory_space<vmem>>, %arg3: memref<1x96xf32, #tpu.memory_space<vmem>>, %arg4: memref<1x8x32xf32, #tpu.memory_space<vmem>>, %arg5: memref<8x96xf32, #tpu.memory_space<vmem>>, %arg6: memref<8x32xf32, #tpu.memory_space<vmem>>) attributes {dimension_semantics = [#tpu.dimension_semantics<parallel>], iteration_bounds = array<i64: 2>, scalar_prefetch = 0 : i64, scratch_operands = 2 : i64, tpu.core_type = #tpu.core_type<tc>, window_params = [{transform_indices = @transform_0, window_bounds = array<i64: 1, 8, 32>}, {pipeline_mode = #tpu.pipeline_mode<synchronous>, transform_indices = @transform_1, window_bounds = array<i64: 32, 96>}, {pipeline_mode = #tpu.pipeline_mode<synchronous>, transform_indices = @transform_2, window_bounds = array<i64: 1, 96>}, {transform_indices = @transform_3, window_bounds = array<i64: 1, 8, 32>}]} {
    %c0 = arith.constant 0 : index
    %c0_0 = arith.constant 0 : index
    %c0_1 = arith.constant 0 : index
    %0 = vector.load %arg1[%c0, %c0_0, %c0_1] : memref<1x8x32xf32, #tpu.memory_space<vmem>>, vector<1x8x32xf32>
    %1 = vector.shape_cast %0 : vector<1x8x32xf32> to vector<8x32xf32>
    %c0_2 = arith.constant 0 : index
    %c0_3 = arith.constant 0 : index
    %2 = vector.load %arg2[%c0_2, %c0_3] : memref<32x96xf32, #tpu.memory_space<vmem>>, vector<32x96xf32>
    %cst = arith.constant dense<0.000000e+00> : vector<8x96xf32>
    %3 = tpu.matmul %1, %2, %cst {dimension_numbers = #tpu.dot_dimension_numbers<[1], [0], [0], [1], [0, 0, 1, 1], [], []>} : vector<8x32xf32>, vector<32x96xf32>, vector<8x96xf32> -> vector<8x96xf32>
    %c0_4 = arith.constant 0 : index
    %c0_5 = arith.constant 0 : index
    %4 = vector.load %arg3[%c0_4, %c0_5] : memref<1x96xf32, #tpu.memory_space<vmem>>, vector<1x96xf32>
    %5 = vector.broadcast %4 : vector<1x96xf32> to vector<8x96xf32>
    %6 = arith.addf %3, %5 : vector<8x96xf32>
    %c0_6 = arith.constant 0 : index
    %c0_7 = arith.constant 0 : index
    %7 = vector.load %arg5[%c0_6, %c0_7] : memref<8x96xf32, #tpu.memory_space<vmem>>, vector<8x96xf32>
    tpu.vector_store %arg5[%c0_6, %c0_7], %6 {strides = array<i32>} : memref<8x96xf32, #tpu.memory_space<vmem>>, vector<8x96xf32>,
    %c0_8 = arith.constant 0 : index
    %c0_9 = arith.constant 0 : index
    %8 = vector.load %arg5[%c0_8, %c0_9] : memref<8x96xf32, #tpu.memory_space<vmem>>, vector<8x16xf32>
    %c0_10 = arith.constant 0 : index
    %c32 = arith.constant 32 : index
    %9 = vector.load %arg5[%c0_10, %c32] : memref<8x96xf32, #tpu.memory_space<vmem>>, vector<8x16xf32>
    %c0_11 = arith.constant 0 : index
    %c64 = arith.constant 64 : index
    %10 = vector.load %arg5[%c0_11, %c64] : memref<8x96xf32, #tpu.memory_space<vmem>>, vector<8x16xf32>
    %cst_12 = arith.constant dense<0.000000e+00> : vector<8x8xf32>
    %11 = tpu.matmul %8, %9, %cst_12 {dimension_numbers = #tpu.dot_dimension_numbers<[1], [1], [0], [0], [0, 0, 1, 0], [], []>} : vector<8x16xf32>, vector<8x16xf32>, vector<8x8xf32> -> vector<8x8xf32>
    %cst_13 = arith.constant dense<0xFF800000> : vector<8xf32>
    %12 = vector.multi_reduction <maximumf>, %11, %cst_13 [1] : vector<8x8xf32> to vector<8xf32>
    %13 = vector.shape_cast %12 : vector<8xf32> to vector<8x1xf32>
    %14 = vector.broadcast %13 : vector<8x1xf32> to vector<8x8xf32>
    %15 = arith.subf %11, %14 : vector<8x8xf32>
    %16 = math.exp %15 : vector<8x8xf32>
    %cst_14 = arith.constant dense<0.000000e+00> : vector<8xf32>
    %17 = vector.multi_reduction <add>, %16, %cst_14 [1] : vector<8x8xf32> to vector<8xf32>
    %18 = vector.shape_cast %17 : vector<8xf32> to vector<8x1xf32>
    %cst_15 = arith.constant dense<0.000000e+00> : vector<8x16xf32>
    %19 = tpu.matmul %16, %10, %cst_15 {dimension_numbers = #tpu.dot_dimension_numbers<[1], [0], [0], [1], [0, 0, 1, 1], [], []>} : vector<8x8xf32>, vector<8x16xf32>, vector<8x16xf32> -> vector<8x16xf32>
    %20 = tpu.reciprocal %18 {approx = true} : vector<8x1xf32> -> vector<8x1xf32>
    %21 = vector.broadcast %20 : vector<8x1xf32> to vector<8x16xf32>
    %22 = arith.mulf %19, %21 : vector<8x16xf32>
    %c0_16 = arith.constant 0 : index
    %c0_17 = arith.constant 0 : index
    %23 = vector.load %arg6[%c0_16, %c0_17] : memref<8x32xf32, #tpu.memory_space<vmem>>, vector<8x16xf32>
    tpu.vector_store %arg6[%c0_16, %c0_17], %22 {strides = array<i32>} : memref<8x32xf32, #tpu.memory_space<vmem>>, vector<8x16xf32>,
    %c0_18 = arith.constant 0 : index
    %c16 = arith.constant 16 : index
    %24 = vector.load %arg5[%c0_18, %c16] : memref<8x96xf32, #tpu.memory_space<vmem>>, vector<8x16xf32>
    %c0_19 = arith.constant 0 : index
    %c48 = arith.constant 48 : index
    %25 = vector.load %arg5[%c0_19, %c48] : memref<8x96xf32, #tpu.memory_space<vmem>>, vector<8x16xf32>
    %c0_20 = arith.constant 0 : index
    %c80 = arith.constant 80 : index
    %26 = vector.load %arg5[%c0_20, %c80] : memref<8x96xf32, #tpu.memory_space<vmem>>, vector<8x16xf32>
    %cst_21 = arith.constant dense<0.000000e+00> : vector<8x8xf32>
    %27 = tpu.matmul %24, %25, %cst_21 {dimension_numbers = #tpu.dot_dimension_numbers<[1], [1], [0], [0], [0, 0, 1, 0], [], []>} : vector<8x16xf32>, vector<8x16xf32>, vector<8x8xf32> -> vector<8x8xf32>
    %cst_22 = arith.constant dense<0xFF800000> : vector<8xf32>
    %28 = vector.multi_reduction <maximumf>, %27, %cst_22 [1] : vector<8x8xf32> to vector<8xf32>
    %29 = vector.shape_cast %28 : vector<8xf32> to vector<8x1xf32>
    %30 = vector.broadcast %29 : vector<8x1xf32> to vector<8x8xf32>
    %31 = arith.subf %27, %30 : vector<8x8xf32>
    %32 = math.exp %31 : vector<8x8xf32>
    %cst_23 = arith.constant dense<0.000000e+00> : vector<8xf32>
    %33 = vector.multi_reduction <add>, %32, %cst_23 [1] : vector<8x8xf32> to vector<8xf32>
    %34 = vector.shape_cast %33 : vector<8xf32> to vector<8x1xf32>
    %cst_24 = arith.constant dense<0.000000e+00> : vector<8x16xf32>
    %35 = tpu.matmul %32, %26, %cst_24 {dimension_numbers = #tpu.dot_dimension_numbers<[1], [0], [0], [1], [0, 0, 1, 1], [], []>} : vector<8x8xf32>, vector<8x16xf32>, vector<8x16xf32> -> vector<8x16xf32>
    %36 = tpu.reciprocal %34 {approx = true} : vector<8x1xf32> -> vector<8x1xf32>
    %37 = vector.broadcast %36 : vector<8x1xf32> to vector<8x16xf32>
    %38 = arith.mulf %35, %37 : vector<8x16xf32>
    %c0_25 = arith.constant 0 : index
    %c16_26 = arith.constant 16 : index
    %39 = vector.load %arg6[%c0_25, %c16_26] : memref<8x32xf32, #tpu.memory_space<vmem>>, vector<8x16xf32>
    tpu.vector_store %arg6[%c0_25, %c16_26], %38 {strides = array<i32>} : memref<8x32xf32, #tpu.memory_space<vmem>>, vector<8x16xf32>,
    %c0_27 = arith.constant 0 : index
    %c0_28 = arith.constant 0 : index
    %40 = vector.load %arg6[%c0_27, %c0_28] : memref<8x32xf32, #tpu.memory_space<vmem>>, vector<8x32xf32>
    %c0_29 = arith.constant 0 : index
    %c0_30 = arith.constant 0 : index
    %c0_31 = arith.constant 0 : index
    %41 = vector.load %arg4[%c0_29, %c0_30, %c0_31] : memref<1x8x32xf32, #tpu.memory_space<vmem>>, vector<1x8x32xf32>
    %42 = vector.shape_cast %41 : vector<1x8x32xf32> to vector<8x32xf32>
    %43 = vector.shape_cast %40 : vector<8x32xf32> to vector<1x8x32xf32>
    tpu.vector_store %arg4[%c0_29, %c0_30, %c0_31], %43 {strides = array<i32>} : memref<1x8x32xf32, #tpu.memory_space<vmem>>, vector<1x8x32xf32>,
    return
  }
  func.func @transform_0(%arg0: i32) -> (i32, i32, i32) {
    %c0_i32 = arith.constant 0 : i32
    %c0_i32_0 = arith.constant 0 : i32
    %c0_i32_1 = arith.constant 0 : i32
    return %arg0, %c0_i32, %c0_i32_0 : i32, i32, i32
  }
  func.func @transform_1(%arg0: i32) -> (i32, i32) {
    %c0_i32 = arith.constant 0 : i32
    %c0_i32_0 = arith.constant 0 : i32
    %c0_i32_1 = arith.constant 0 : i32
    return %c0_i32, %c0_i32_0 : i32, i32
  }
  func.func @transform_2(%arg0: i32) -> (i32, i32) {
    %c0_i32 = arith.constant 0 : i32
    %c0_i32_0 = arith.constant 0 : i32
    %c0_i32_1 = arith.constant 0 : i32
    return %c0_i32, %c0_i32_0 : i32, i32
  }
  func.func @transform_3(%arg0: i32) -> (i32, i32, i32) {
    %c0_i32 = arith.constant 0 : i32
    %c0_i32_0 = arith.constant 0 : i32
    %c0_i32_1 = arith.constant 0 : i32
    return %arg0, %c0_i32, %c0_i32_0 : i32, i32, i32
  }
}

</mosaic_0001>

<bundles_post_ra>
// kernel: tpu_custom_call.1
= control target key start
LH: loop header
LB: loop body
LE: loop exit
PB: predicated region body
PF: predicated region fallthrough
CT: control target
= control target key end

     0   :  { %8 = vsyncpa [#allocation5], 0  ;;  %s891_s0 = inlined_call_operand.hbm [shape: f32[2,8,32], index: 0, kind: input, shape index: {}]   ;;  %s892_s1 = inlined_call_operand.hbm [shape: f32[32,96], index: 1, kind: input, shape index: {}]   ;;  %s893_s2 = inlined_call_operand.vmem [shape: f32[1,96], index: 2, kind: input, shape index: {}]   ;;  %s894_s3 = inlined_call_operand.hbm [shape: f32[2,8,32], index: 3, kind: output, shape index: {}]  }
   0x1   :  { %10 = vsyncpa [#allocation5 + $0x1], 0 }
   0x2   :  { %11 = vsyncpa [#allocation8], 0 }
   0x3   :  { %12 = vsyncpa [#allocation6], 0 }
   0x4   :  { %14 = vsyncpa [#allocation6 + $0x1], 0  ;;  %s735_s12 = smov 0   ;;  %s737_s13 = smov 0  }
   0x5   :  { %s739_s14 = smov 0   ;;  %s741_s15 = smov 0  }
   0x6 LB: > { %s130_s18 = sshll.u32 %s892_s1, 4  ;;  %s759_s19 = sadd.s32 4294967295, %s704_s15   ;;  %s704_s15 = sphi %s741_s15, %s904_s15   ;;  %s700_s14 = sphi %s739_s14, %s903_s14   ;;  %s696_s13 = sphi %s737_s13, %s902_s13   ;;  %s692_s12 = sphi %s735_s12, %s901_s12   ;;  %s131_s18 = int_to_ptr.hbm [resolvable:$true] %s130_s18 }
   0x7   : > { %p480_p0 = scmp.ge.s32.totalorder %s704_s15, 1  ;;  %p41_p1 = scmp.eq.s32.totalorder %s759_s19, 0 }
   0x8   : > { %p119_p2 = scmp.lt.s32.totalorder %s704_s15, 3  ;;  %s706_s21 = smov [#allocation7]  }
   0x9   : > { %s132_s22 = sshll.u32 %s706_s21, 4  ;;  %s707_s23 = smov 128   ;;  %s133_s22 = int_to_ptr.vmem [resolvable:$true] %s132_s22 }
   0xa   : > { %p764_p3 = pnand %p480_p0, %p119_p2  ;;  %s708_s24 = smov 8  }
   0xb   : > { %s479_s25 = sadd.s32 4294967294, %s704_s15   ;;  %s775_s26 = sadd.s32 1, %s704_s15  }
   0xc   : > { %p508_p4 = pneg %p764_p3  ;;  %s27_s27 = sadd.s32 1, %s700_s14 }
   0xd   : > { %s24_s28 = ssub.s32 %s704_s15, %s775_s26  ;;  %p34_p7 = scmp.ne.s32.totalorder %s700_s14, %s696_s13 }
   0xe   : > { %p509_p6 = pnand %p508_p4, %p41_p1  ;;  %p25_p8 = scmp.eq.s32.totalorder %s24_s28, 0 }
   0xf   : > { %p35_p9 = scmp.eq.s32.totalorder %s704_s15, 0  ;;  %p40_p10 = scmp.ne.s32.totalorder %s696_s13, %s692_s12 }
  0x10   : > { %511 = dma.hbm_to_vmem [thread:$0]  (!%p509_p6), %s131_s18, 512, %s133_s22, [#allocation8], %s707_s23, %s707_s23, %s708_s24  }
  0x11   : > { %p106_p11 = scmp.eq.s32.totalorder %s759_s19, 1  ;;  %p791_p12 = por %p41_p1, %p40_p10 }
  0x12   : > { %s787_s29 = scalar_select %p25_p8, %s700_s14, %s27_s27  }
  0x13   : > { %p795_p13 = por %p106_p11, %p34_p7  ;;  %p112_p0 = scmp.eq.s32.totalorder %s479_s25, 1 }
  0x14   : > { %p36_p2 = por %p35_p9, %p34_p7  ;;  %s149_s5 = sand.u32 1, %s700_s14  }
  0x15   : > { %p800_p4 = por %p112_p0, %p40_p10  ;;  %p521_p6 = scmp.lt.s32.totalorder %s704_s15, 2 }
  0x16   : > { %s483_s7 = sshll.u32 %s149_s5, 3  ;;  %s484_s8 = sshll.u32 %s704_s15, 3 }
  0x17   : > { %s157_s11 = scalar_lea.hbm %s891_s0, %s484_s8  ;;  %s153_s17 = scalar_lea.vmem [#allocation4], %s483_s7 }
  0x18   : > { %s159_s16 = sshll.u32 %s157_s11, 4  ;;  %s161_s18 = sshll.u32 %s153_s17, 4  ;;  %s160_s16 = int_to_ptr.hbm [resolvable:$true] %s159_s16  ;;  %s162_s18 = int_to_ptr.vmem [resolvable:$true] %s161_s18 }
  0x19   : > { %p809_p8 = pnand %p521_p6, %p36_p2  ;;  %s150_s22 = scalar_lea.sflag [#allocation5], %s149_s5 }
  0x1a   : > { %s604_s23 = sshra.s32 %s160_s16, 4  ;;  %s611_s28 = scalar_lea.hbm %s891_s0, 16  ;;  %s605_s23 = int_to_ptr.hbm [resolvable:$true] %s604_s23 }
  0x1b   : > { %s606_s24 = scalar_lea.hbm %s605_s23, 8  ;;  %p608_p9 = pneg %p809_p8 }
  0x1c   : > { %p607_p7 = scmp.ne.s32.totalorder %s605_s23, %s606_s24  ;;  %p612_p0 = scmp.lt.s32.totalorder %s605_s23, %s891_s0 }
  0x1d   : > { %p613_p2 = scmp.lt.s32.totalorder %s611_s28, %s606_s24 }
  0x1e   : > { %p609_p10 = pnand %p608_p9, %p607_p7 }
  0x1f   : > { %p614_p6 = por %p613_p2, %p612_p0 }
  0x20   : > { %p610_p11 = pneg %p609_p10 }
  0x22   : > { %p615_p5 = pnand %p614_p6, %p610_p11 }
  0x24   : > { %618 = shalt.err (!%p615_p5)
}
  0x25   : > { %515 = dma.hbm_to_vmem [thread:$0]  (!%p809_p8), %s160_s16, 128, %s162_s18, %s150_s22  }
  0x26   : > { %170 = sbr.rel (%p764_p3) target bundleno = 842 (0x34a), region = 32  ;;  %s826_s5 = sand.u32 (!%p764_p3), 1, %s696_s13  }
  0x27   : > { %s486_s9 = sshll.u32 (!%p764_p3), %s826_s5, 3  ;;  %s173_s10 = scalar_lea.sflag (!%p764_p3), [#allocation5], %s826_s5 }
  0x28   : > { %s176_s11 = scalar_lea.vmem (!%p764_p3), [#allocation4], %s486_s9 }
  0x2b   : > { %679 = dma.done.wait (%p791_p12), %s173_s10, 128  }
  0x2c   : > { %681 = vsyncadd (%p791_p12), %s173_s10, 4294967168 }
  0x2d   : > { %683 = dma.done.wait (%p41_p1), [#allocation8], 512  }
  0x2e   : > { %685 = vsyncadd (%p41_p1), [#allocation8], 4294966784  ;;  %v209_v0 = vld [vmem:[#allocation7 + $0x18] sm:$0xff]  ;;  %v208_v1 = vld [vmem:[#allocation7 + $0x10] sm:$0xff]  ;;  %vm214_vm0 = vcmask 261120   ;;  %vm238_vm1 = vcmask 785408  }
  0x2f   : > { %230 = vmatpush.msra.mxu0 %v209_v0  ;;  %v207_v2 = vld [vmem:[#allocation7 + $0x8] sm:$0xff]  ;;  %v206_v3 = vld [vmem:[#allocation7] sm:$0xff]  ;;  %v205_v4 = vld [vmem:[%s176_s11] sm:$0xff]  ;;  %s709_s16 = smov 112   ;;  %s710_s17 = smov 96   ;;  %vm244_vm2 = vcmask 130048  }
  0x30   : > { %v565_v5 = vld [vmem:[%s893_s2] ss:$0 sm:$0xff]  ;;  %s711_s18 = smov 80   ;;  %s712_s21 = smov 48   ;;  %vm269_vm3 = vcmask 64512   ;;  %vm379_vm4 = vcmask 261248  }
  0x31   : > { %231 = vmatpush.msra.mxu0 %v208_v1  ;;  %s713_s22 = smov 64   ;;  %s714_s23 = smov 16  }
  0x32   : > { %s497_s24 = sshll.u32 %s759_s19, 3  ;;  %s204_s7 = scalar_lea.vmem [#allocation9], %s486_s9 }
  0x33   : > { %232 = vmatpush.msra.mxu0 %v207_v2  ;;  %s394_s28 = scalar_lea.hbm %s894_s3, %s497_s24  ;;  %s396_s8 = sshll.u32 %s204_s7, 4  ;;  %s397_s8 = int_to_ptr.vmem [resolvable:$true] %s396_s8 }
  0x34   : > { %s398_s10 = sshll.u32 %s394_s28, 4  ;;  %s384_s11 = scalar_lea.sflag [#allocation6], %s826_s5  ;;  %s399_s10 = int_to_ptr.hbm [resolvable:$true] %s398_s10 }
  0x35   : > { %233 = vmatpush.msra.mxu0 %v206_v3  ;;  %s648_s20 = sshra.s32 %s399_s10, 4  ;;  %s649_s20 = int_to_ptr.hbm [resolvable:$true] %s648_s20 }
  0x36   : > { %489 = vmatmul.msk.f32.vlgmr.msra.gmra.mxu0 %vm214_vm0, %v205_v4  ;;  %s650_s19 = scalar_lea.hbm %s649_s20, 8  ;;  %p655_p12 = scmp.lt.s32.totalorder %s649_s20, %s894_s3 }
  0x37   : > { %p651_p1 = scmp.ne.s32.totalorder %s649_s20, %s650_s19 }
  0x39   : > { %p652_p3 = pnand %p651_p1, %p795_p13 }
  0x3b   : > { %p653_p5 = pneg %p652_p3 }
  0xb3   : > { %v235_v6 = vpop.f32.mrf.mxu0 }
  0xb4   : > { %v236_v7 = vadd.f32 %v565_v5, %v235_v6 }
  0xb6   : > { %239 = vst.msk [vmem:[#allocation2] sm:$0xff] %vm238_vm1, %v236_v7 }
  0xbd   : > { %v308_v8 = vld [vmem:[#allocation2] sm:$0xff] }
  0xbe   : > { %310 = vrot.lane.b32.xlu1 %v308_v8, %s709_s16  ;;  %242 = vrot.lane.b32.xlu0 %v308_v8, %s710_s17  ;;  %s654_s17 = scalar_lea.hbm %s894_s3, 16 }
  0xbf   : > { %p656_p8 = scmp.lt.s32.totalorder %s654_s17, %s650_s19 }
  0xc1   : > { %p657_p7 = por %p656_p8, %p655_p12 }
  0xc3   : > { %p658_p9 = pnand %p657_p7, %p653_p5 }
  0xc6   : > { %312 = vrot.lane.b32.xlu0 %v308_v8, %s711_s18 }
  0xce   : > { %347 = vrot.lane.b32.xlu0 %v308_v8, %s712_s21 }
 0x130   : > { %v243_v9 = vpop.permute.xlu0 %242  ;;  %v311_v11 = vpop.permute.xlu1 %310 }
 0x131   : > { %490 = vmatpush.xpose.msk.msra.mxu1 %vm244_vm2, %v243_v9 }
 0x134   : > { %491 = vmatmul.msk.f32.vlgmr.msra.gmra.mxu1 %vm244_vm2, %v308_v8 }
 0x138   : > { %v313_v10 = vpop.permute.xlu0 %312 }
 0x139   : > { %493 = vmatpush.xpose.msk.msra.mxu3 %vm244_vm2, %v313_v10 }
 0x13c   : > { %494 = vmatmul.msk.f32.vlgmr.msra.gmra.mxu3 %vm244_vm2, %v311_v11 }
 0x140   : > { %v348_v25 = vpop.permute.xlu0 %347 }
 0x1b1   : > { %v266_v12 = vpop.f32.mrf.mxu1 }
 0x1b2   : > { %v270_v13 = vsel %vm269_vm3, %v266_v12, -inf }
 0x1b3   : > { %271 = vmax.xlane.f32.xlu1 %v270_v13 }
 0x1bf   : > { %v335_v14 = vpop.f32.mrf.mxu3 }
 0x1c0   : > { %v338_v15 = vsel %vm269_vm3, %v335_v14, -inf }
 0x1c1   : > { %339 = vmax.xlane.f32.xlu2 %v338_v15 }
 0x1d9   : > { %279 = vrot.lane.b32.xlu2 %v308_v8, %s713_s22 }
 0x226   : > { %v272_v16 = vpop.xlane.xlu1 %271 }
 0x227   : > { %v273_v17 = vsub.f32 %v266_v12, %v272_v16 }
 0x229   : > { %v274_v18 = vmul.f32 1.442695, %v273_v17 }
 0x22b   : > { %566 = vpow2.f32 %v274_v18 }
 0x231   : > { %v567_v19 = vpop.eup %566 }
 0x232   : > { %v276_v20 = vsel %vm269_vm3, %v567_v19, 0.0 }
 0x233   : > { %277 = vadd.xlane.f32.xlu2 %v276_v20 }
 0x234   : > { %v340_v21 = vpop.xlane.xlu2 %339 }
 0x235   : > { %v341_v22 = vsub.f32 %v335_v14, %v340_v21 }
 0x237   : > { %v342_v23 = vmul.f32 1.442695, %v341_v22 }
 0x239   : > { %568 = vpow2.f32 %v342_v23 }
 0x23c   : > { %v280_v24 = vpop.permute.xlu2 %279 }
 0x23d   : > { %300 = vmatpush.msra.mxu2 %v280_v24 }
 0x23e   : > { %492 = vmatmul.msk.f32.vlgmr.msra.gmra.mxu2 %vm269_vm3, %v567_v19 }
 0x23f   : > { %v569_v26 = vpop.eup %568  ;;  %368 = vmatpush.msrb.mxu2 %v348_v25 }
 0x240   : > { %v344_v27 = vsel %vm269_vm3, %v569_v26, 0.0 }
 0x241   : > { %345 = vadd.xlane.f32.xlu0 %v344_v27 }
 0x246   : > { %495 = vmatmul.msk.f32.vlgmr.msrb.gmra.mxu2 %vm269_vm3, %v569_v26 }
 0x2a6   : > { %v278_v28 = vpop.xlane.xlu2 %277 }
 0x2a7   : > { %570 = vrcp.f32 %v278_v28 }
 0x2ad   : > { %v571_v30 = vpop.eup %570 }
 0x2b4   : > { %v346_v29 = vpop.xlane.xlu0 %345 }
 0x2b5   : > { %572 = vrcp.f32 %v346_v29 }
 0x2bb   : > { %v573_v33 = vpop.eup %572 }
 0x2c1   : > { %v302_v31 = vpop.f32.mrf.mxu2 }
 0x2c2   : > { %v306_v32 = vmul.f32 %v571_v30, %v302_v31 }
 0x2c4   : > { %307 = vst.msk [vmem:[#allocation3] sm:$0xff] %vm244_vm2, %v306_v32 }
 0x2c9   : > { %v370_v34 = vpop.f32.mrf.mxu2 }
 0x2ca   : > { %v374_v35 = vmul.f32 %v573_v33, %v370_v34 }
 0x2cc   : > { %376 = vrot.lane.b32.xlu1 %v374_v35, %s714_s23 }
 0x33e   : > { %v377_v36 = vpop.permute.xlu1 %376 }
 0x33f   : > { %380 = vst.msk [vmem:[#allocation3] sm:$0xff] %vm379_vm4, %v377_v36 }
 0x346   : > { %v381_v37 = vld [vmem:[#allocation3] sm:$0xff] }
 0x347   : > { %382 = vst.msk [vmem:[%s204_s7] sm:$0xff] %vm214_vm0, %v381_v37 }
 0x348   : > { %661 = shalt.err (!%p658_p9)
}
 0x349   : > { %506 = dma.vmem_to_hbm [thread:$0]  (%p795_p13), %s397_s8, 128, %s399_s10, %s384_s11  }
 0x34a PF: > { %s410_s5 = sand.u32 1, %s692_s12   ;;  %p900_p10 = scmp.ge.s32.totalorder %s704_s15, 2 }
 0x34b   : > { %s411_s21 = scalar_lea.sflag [#allocation6], %s410_s5 }
 0x34c   : > { %p517_p11 = pnand %p900_p10, %p800_p4 }
 0x34e   : > { %p518_p0 = pneg %p517_p11 }
 0x350   : > { %687 = dma.done.wait (%p518_p0), %s411_s21, 128  }
 0x351   : > { %689 = vsyncadd (%p518_p0), %s411_s21, 4294967168  ;;  %p17_p2 = scmp.ge.s32.totalorder %s775_s26, 4   ;;  %s901_s12 = smov %s696_s13 }
 0x352   : > { %s902_s13 = smov %s700_s14  ;;  %s903_s14 = smov %s787_s29 }
 0x353   : > { %s904_s15 = smov %s775_s26  ;;  %19 = sbr.rel (!%p17_p2) target bundleno = 6 (0x6), region = 81 }
 0x358   :  { %417 = vsyncpa [#allocation5], 1 }
 0x359   :  { %419 = vsyncpa [#allocation5 + $0x1], 1 }
 0x35a   :  { %420 = vsyncpa [#allocation8], 1 }
 0x35b   :  { %421 = vsyncpa [#allocation6], 1 }
 0x35c   :  { %423 = vsyncpa [#allocation6 + $0x1], 1 }

</bundles_post_ra>
